<compile_context>
chip_gen: v7x
topology: tpu7x:2x2x1
jax: 0.10.0
libtpu: 0.0.40
codegen_flags: <defaults>
</compile_context>

<pallas_src>
import functools

import jax
import jax.numpy as jnp
from jax.experimental import pallas as pl
from jax.experimental.pallas import tpu as pltpu


def _maxpool_relu_kernel(xm_ref, xh_ref, o_ref, *, k, s):
    """Fused MaxPool(k, s, pad=(k-1)//2) + ReLU for one (batch, row-tile) block.

    xm_ref: (1, th, s, LW, s*C)  main row tile of the padded input; padded row
            s*a + rh lives at [a, rh, ...], padded col s*m + rw lives at
            [..., m, rw*C:(rw+1)*C]  (free reshape done in the wrapper).
    xh_ref: (1, 1,  s, LW, s*C)  halo: the row-group right after this tile.
    o_ref : (1, th, wo, C)       output tile (accumulated in place).
    """
    _, th, wo, c = o_ref.shape
    # ReLU folded into the init: relu(max(window)) == max(window ∪ {0}).
    o_ref[...] = jnp.zeros_like(o_ref)
    for di in range(k):                      # window row offset
        qh, rh = divmod(di, s)
        for dj in range(k):                  # window col offset
            qw, rw = divmod(dj, s)
            cols = pl.ds(qw, wo)             # contiguous slice over split-W
            lanes = pl.ds(rw * c, c)         # phase rw's channel group
            if qh == 0:
                # All th output rows read split-row a (a = output row) directly.
                win = xm_ref[0, pl.ds(0, th), rh, cols, lanes]
                o_ref[0] = jnp.maximum(o_ref[0], win)
            else:
                # Output rows [0, th-1) read split-row a+1 from the main tile;
                # the tile's last output row reads it from the halo block.
                if th > 1:
                    win = xm_ref[0, pl.ds(1, th - 1), rh, cols, lanes]
                    o_ref[0, pl.ds(0, th - 1)] = jnp.maximum(
                        o_ref[0, pl.ds(0, th - 1)], win)
                winh = xh_ref[0, 0, rh, cols, lanes]
                o_ref[0, th - 1] = jnp.maximum(o_ref[0, th - 1], winh)


def ukan_downsample_block(x_nchw, kernel_size=3, stride=2, *, row_tile=None):
    """MaxPool2d(kernel_size, stride, padding=(k-1)//2) + ReLU.  NCHW in/out."""
    k, s = int(kernel_size), int(stride)
    if not (1 <= k <= 2 * s):
        raise NotImplementedError(
            "kernel assumes kernel_size <= 2*stride (UKANDownSampleBlock uses 3, 2)")
    pad = (k - 1) // 2
    n, c, h, w = x_nchw.shape
    ho = (h + 2 * pad - k) // s + 1
    wo = (w + 2 * pad - k) // s + 1
    q = (k - 1) // s                     # 0 or 1 given k <= 2s

    lw = wo + q
    wp = s * lw                          # padded width (multiple of s)

    # Row-tile the output so each double-buffered input block is ~2 MiB and the
    # grid has enough steps to overlap DMA with the VPU max ops.
    itemsize = jnp.dtype(x_nchw.dtype).itemsize
    row_bytes = s * wp * c * itemsize    # padded-input bytes per output row
    if row_tile is None:
        row_tile = max(1, (2 << 20) // max(1, row_bytes))
    th = max(1, min(int(row_tile), ho))
    n_rt = pl.cdiv(ho, th)
    th = pl.cdiv(ho, n_rt)               # balance tiles
    n_rt = pl.cdiv(ho, th)

    lh = n_rt * th + 1                   # +1 split-row so the halo block is in range
    hp = s * lh                          # padded height (multiple of s)
    pad_bot = hp - h - pad
    pad_right = wp - w - pad
    assert pad_bot >= 0 and pad_right >= 0, (pad_bot, pad_right)

    # Layout glue (one fused XLA pass + a free reshape):
    #   NCHW -> NHWC, zero-pad, then reshape (N, Hp, Wp, C) -> (N, LH, s, LW, s*C)
    # so padded row s*a+rh is [a, rh] and padded col s*m+rw is [m, rw*C + c].
    xt = jnp.transpose(x_nchw, (0, 2, 3, 1))
    xp = jnp.pad(xt, ((0, 0), (pad, pad_bot), (pad, pad_right), (0, 0)))
    xr = xp.reshape(n, lh, s, lw, s * c)

    out_nhwc = pl.pallas_call(
        functools.partial(_maxpool_relu_kernel, k=k, s=s),
        out_shape=jax.ShapeDtypeStruct((n, ho, wo, c), x_nchw.dtype),
        grid_spec=pltpu.PrefetchScalarGridSpec(
            num_scalar_prefetch=0,
            grid=(n, n_rt),
            in_specs=[
                # main row tile
                pl.BlockSpec((1, th, s, lw, s * c),
                             lambda b, i: (b, i, 0, 0, 0)),
                # one-row halo (same array, tiny block right after the tile)
                pl.BlockSpec((1, 1, s, lw, s * c),
                             lambda b, i: (b, (i + 1) * th, 0, 0, 0)),
            ],
            out_specs=pl.BlockSpec((1, th, wo, c),
                                   lambda b, i: (b, i, 0, 0)),
        ),
        compiler_params=pltpu.CompilerParams(
            dimension_semantics=("parallel", "parallel")),
    )(xr, xr)

    return jnp.transpose(out_nhwc, (0, 3, 1, 2))     # back to NCHW


def _reference(x_nchw, k=3, s=2):
    pad = (k - 1) // 2
    r = jax.lax.reduce_window(
        x_nchw, jnp.array(-jnp.inf, x_nchw.dtype), jax.lax.max,
        window_dimensions=(1, 1, k, k),
        window_strides=(1, 1, s, s),
        padding=((0, 0), (0, 0), (pad, pad), (pad, pad)))
    return jnp.maximum(r, 0.0).astype(x_nchw.dtype)


if __name__ == "__main__":
    key = jax.random.PRNGKey(0)
    x = jax.random.normal(key, (2, 4, 16, 16), dtype=jnp.float32)   # NCHW

    y = jax.block_until_ready(ukan_downsample_block(x))
    ref = _reference(x)
    assert y.shape == ref.shape == (2, 4, 8, 8), y.shape
    assert y.dtype == x.dtype
    assert jnp.allclose(y, ref, atol=1e-6), float(jnp.max(jnp.abs(y - ref)))

    # Exercise the multi-row-tile + halo + partial-edge-tile code path.
    y2 = jax.block_until_ready(ukan_downsample_block(x, row_tile=3))
    assert jnp.allclose(y2, ref, atol=1e-6)

    # bf16 stays bf16 end to end (halves HBM traffic on v6e/v7x).
    xb = x.astype(jnp.bfloat16)
    yb = jax.block_until_ready(ukan_downsample_block(xb, row_tile=2))
    refb = _reference(xb)
    assert yb.dtype == jnp.bfloat16
    assert jnp.allclose(yb.astype(jnp.float32), refb.astype(jnp.float32))

    print("KERNEL_OK")
</pallas_src>

<mosaic_0001>
module attributes {stable_mosaic.version = 11 : i64} {
  func.func @_maxpool_relu_kernel(%arg0: i32, %arg1: i32, %arg2: memref<1x8x2x9x8xf32, #tpu.memory_space<vmem>>, %arg3: memref<1x1x2x9x8xf32, #tpu.memory_space<vmem>>, %arg4: memref<1x8x8x4xf32, #tpu.memory_space<vmem>>) attributes {dimension_semantics = [#tpu.dimension_semantics<parallel>, #tpu.dimension_semantics<parallel>], iteration_bounds = array<i64: 2, 1>, scalar_prefetch = 0 : i64, scratch_operands = 0 : i64, tpu.core_type = #tpu.core_type<tc>, window_params = [{transform_indices = @transform_0, window_bounds = array<i64: 1, 8, 2, 9, 8>}, {transform_indices = @transform_1, window_bounds = array<i64: 1, 1, 2, 9, 8>}, {transform_indices = @transform_2, window_bounds = array<i64: 1, 8, 8, 4>}]} {
    %cst = arith.constant 0.000000e+00 : f32
    %0 = vector.broadcast %cst : f32 to vector<1x8x8x4xf32>
    %c0 = arith.constant 0 : index
    %c0_0 = arith.constant 0 : index
    %c0_1 = arith.constant 0 : index
    %c0_2 = arith.constant 0 : index
    %1 = vector.load %arg4[%c0, %c0_0, %c0_1, %c0_2] : memref<1x8x8x4xf32, #tpu.memory_space<vmem>>, vector<1x8x8x4xf32>
    tpu.vector_store %arg4[%c0, %c0_0, %c0_1, %c0_2], %0 {strides = array<i32>} : memref<1x8x8x4xf32, #tpu.memory_space<vmem>>, vector<1x8x8x4xf32>,
    %c0_3 = arith.constant 0 : index
    %c0_4 = arith.constant 0 : index
    %c0_5 = arith.constant 0 : index
    %c0_6 = arith.constant 0 : index
    %c0_7 = arith.constant 0 : index
    %2 = vector.load %arg2[%c0_3, %c0_4, %c0_5, %c0_6, %c0_7] : memref<1x8x2x9x8xf32, #tpu.memory_space<vmem>>, vector<1x8x1x8x4xf32>
    %3 = vector.shape_cast %2 : vector<1x8x1x8x4xf32> to vector<8x8x4xf32>
    %c0_8 = arith.constant 0 : index
    %c0_9 = arith.constant 0 : index
    %c0_10 = arith.constant 0 : index
    %c0_11 = arith.constant 0 : index
    %4 = vector.load %arg4[%c0_8, %c0_9, %c0_10, %c0_11] : memref<1x8x8x4xf32, #tpu.memory_space<vmem>>, vector<1x8x8x4xf32>
    %5 = vector.shape_cast %4 : vector<1x8x8x4xf32> to vector<8x8x4xf32>
    %6 = arith.maximumf %5, %3 : vector<8x8x4xf32>
    %c0_12 = arith.constant 0 : index
    %c0_13 = arith.constant 0 : index
    %c0_14 = arith.constant 0 : index
    %c0_15 = arith.constant 0 : index
    %7 = vector.load %arg4[%c0_12, %c0_13, %c0_14, %c0_15] : memref<1x8x8x4xf32, #tpu.memory_space<vmem>>, vector<1x8x8x4xf32>
    %8 = vector.shape_cast %7 : vector<1x8x8x4xf32> to vector<8x8x4xf32>
    %9 = vector.shape_cast %6 : vector<8x8x4xf32> to vector<1x8x8x4xf32>
    tpu.vector_store %arg4[%c0_12, %c0_13, %c0_14, %c0_15], %9 {strides = array<i32>} : memref<1x8x8x4xf32, #tpu.memory_space<vmem>>, vector<1x8x8x4xf32>,
    %c0_16 = arith.constant 0 : index
    %c0_17 = arith.constant 0 : index
    %c0_18 = arith.constant 0 : index
    %c0_19 = arith.constant 0 : index
    %c4 = arith.constant 4 : index
    %10 = vector.load %arg2[%c0_16, %c0_17, %c0_18, %c0_19, %c4] : memref<1x8x2x9x8xf32, #tpu.memory_space<vmem>>, vector<1x8x1x8x4xf32>
    %11 = vector.shape_cast %10 : vector<1x8x1x8x4xf32> to vector<8x8x4xf32>
    %c0_20 = arith.constant 0 : index
    %c0_21 = arith.constant 0 : index
    %c0_22 = arith.constant 0 : index
    %c0_23 = arith.constant 0 : index
    %12 = vector.load %arg4[%c0_20, %c0_21, %c0_22, %c0_23] : memref<1x8x8x4xf32, #tpu.memory_space<vmem>>, vector<1x8x8x4xf32>
    %13 = vector.shape_cast %12 : vector<1x8x8x4xf32> to vector<8x8x4xf32>
    %14 = arith.maximumf %13, %11 : vector<8x8x4xf32>
    %c0_24 = arith.constant 0 : index
    %c0_25 = arith.constant 0 : index
    %c0_26 = arith.constant 0 : index
    %c0_27 = arith.constant 0 : index
    %15 = vector.load %arg4[%c0_24, %c0_25, %c0_26, %c0_27] : memref<1x8x8x4xf32, #tpu.memory_space<vmem>>, vector<1x8x8x4xf32>
    %16 = vector.shape_cast %15 : vector<1x8x8x4xf32> to vector<8x8x4xf32>
    %17 = vector.shape_cast %14 : vector<8x8x4xf32> to vector<1x8x8x4xf32>
    tpu.vector_store %arg4[%c0_24, %c0_25, %c0_26, %c0_27], %17 {strides = array<i32>} : memref<1x8x8x4xf32, #tpu.memory_space<vmem>>, vector<1x8x8x4xf32>,
    %c0_28 = arith.constant 0 : index
    %c0_29 = arith.constant 0 : index
    %c0_30 = arith.constant 0 : index
    %c1 = arith.constant 1 : index
    %c0_31 = arith.constant 0 : index
    %18 = vector.load %arg2[%c0_28, %c0_29, %c0_30, %c1, %c0_31] : memref<1x8x2x9x8xf32, #tpu.memory_space<vmem>>, vector<1x8x1x8x4xf32>
    %19 = vector.shape_cast %18 : vector<1x8x1x8x4xf32> to vector<8x8x4xf32>
    %c0_32 = arith.constant 0 : index
    %c0_33 = arith.constant 0 : index
    %c0_34 = arith.constant 0 : index
    %c0_35 = arith.constant 0 : index
    %20 = vector.load %arg4[%c0_32, %c0_33, %c0_34, %c0_35] : memref<1x8x8x4xf32, #tpu.memory_space<vmem>>, vector<1x8x8x4xf32>
    %21 = vector.shape_cast %20 : vector<1x8x8x4xf32> to vector<8x8x4xf32>
    %22 = arith.maximumf %21, %19 : vector<8x8x4xf32>
    %c0_36 = arith.constant 0 : index
    %c0_37 = arith.constant 0 : index
    %c0_38 = arith.constant 0 : index
    %c0_39 = arith.constant 0 : index
    %23 = vector.load %arg4[%c0_36, %c0_37, %c0_38, %c0_39] : memref<1x8x8x4xf32, #tpu.memory_space<vmem>>, vector<1x8x8x4xf32>
    %24 = vector.shape_cast %23 : vector<1x8x8x4xf32> to vector<8x8x4xf32>
    %25 = vector.shape_cast %22 : vector<8x8x4xf32> to vector<1x8x8x4xf32>
    tpu.vector_store %arg4[%c0_36, %c0_37, %c0_38, %c0_39], %25 {strides = array<i32>} : memref<1x8x8x4xf32, #tpu.memory_space<vmem>>, vector<1x8x8x4xf32>,
    %c0_40 = arith.constant 0 : index
    %c0_41 = arith.constant 0 : index
    %c1_42 = arith.constant 1 : index
    %c0_43 = arith.constant 0 : index
    %c0_44 = arith.constant 0 : index
    %26 = vector.load %arg2[%c0_40, %c0_41, %c1_42, %c0_43, %c0_44] : memref<1x8x2x9x8xf32, #tpu.memory_space<vmem>>, vector<1x8x1x8x4xf32>
    %27 = vector.shape_cast %26 : vector<1x8x1x8x4xf32> to vector<8x8x4xf32>
    %c0_45 = arith.constant 0 : index
    %c0_46 = arith.constant 0 : index
    %c0_47 = arith.constant 0 : index
    %c0_48 = arith.constant 0 : index
    %28 = vector.load %arg4[%c0_45, %c0_46, %c0_47, %c0_48] : memref<1x8x8x4xf32, #tpu.memory_space<vmem>>, vector<1x8x8x4xf32>
    %29 = vector.shape_cast %28 : vector<1x8x8x4xf32> to vector<8x8x4xf32>
    %30 = arith.maximumf %29, %27 : vector<8x8x4xf32>
    %c0_49 = arith.constant 0 : index
    %c0_50 = arith.constant 0 : index
    %c0_51 = arith.constant 0 : index
    %c0_52 = arith.constant 0 : index
    %31 = vector.load %arg4[%c0_49, %c0_50, %c0_51, %c0_52] : memref<1x8x8x4xf32, #tpu.memory_space<vmem>>, vector<1x8x8x4xf32>
    %32 = vector.shape_cast %31 : vector<1x8x8x4xf32> to vector<8x8x4xf32>
    %33 = vector.shape_cast %30 : vector<8x8x4xf32> to vector<1x8x8x4xf32>
    tpu.vector_store %arg4[%c0_49, %c0_50, %c0_51, %c0_52], %33 {strides = array<i32>} : memref<1x8x8x4xf32, #tpu.memory_space<vmem>>, vector<1x8x8x4xf32>,
    %c0_53 = arith.constant 0 : index
    %c0_54 = arith.constant 0 : index
    %c1_55 = arith.constant 1 : index
    %c0_56 = arith.constant 0 : index
    %c4_57 = arith.constant 4 : index
    %34 = vector.load %arg2[%c0_53, %c0_54, %c1_55, %c0_56, %c4_57] : memref<1x8x2x9x8xf32, #tpu.memory_space<vmem>>, vector<1x8x1x8x4xf32>
    %35 = vector.shape_cast %34 : vector<1x8x1x8x4xf32> to vector<8x8x4xf32>
    %c0_58 = arith.constant 0 : index
    %c0_59 = arith.constant 0 : index
    %c0_60 = arith.constant 0 : index
    %c0_61 = arith.constant 0 : index
    %36 = vector.load %arg4[%c0_58, %c0_59, %c0_60, %c0_61] : memref<1x8x8x4xf32, #tpu.memory_space<vmem>>, vector<1x8x8x4xf32>
    %37 = vector.shape_cast %36 : vector<1x8x8x4xf32> to vector<8x8x4xf32>
    %38 = arith.maximumf %37, %35 : vector<8x8x4xf32>
    %c0_62 = arith.constant 0 : index
    %c0_63 = arith.constant 0 : index
    %c0_64 = arith.constant 0 : index
    %c0_65 = arith.constant 0 : index
    %39 = vector.load %arg4[%c0_62, %c0_63, %c0_64, %c0_65] : memref<1x8x8x4xf32, #tpu.memory_space<vmem>>, vector<1x8x8x4xf32>
    %40 = vector.shape_cast %39 : vector<1x8x8x4xf32> to vector<8x8x4xf32>
    %41 = vector.shape_cast %38 : vector<8x8x4xf32> to vector<1x8x8x4xf32>
    tpu.vector_store %arg4[%c0_62, %c0_63, %c0_64, %c0_65], %41 {strides = array<i32>} : memref<1x8x8x4xf32, #tpu.memory_space<vmem>>, vector<1x8x8x4xf32>,
    %c0_66 = arith.constant 0 : index
    %c0_67 = arith.constant 0 : index
    %c1_68 = arith.constant 1 : index
    %c1_69 = arith.constant 1 : index
    %c0_70 = arith.constant 0 : index
    %42 = vector.load %arg2[%c0_66, %c0_67, %c1_68, %c1_69, %c0_70] : memref<1x8x2x9x8xf32, #tpu.memory_space<vmem>>, vector<1x8x1x8x4xf32>
    %43 = vector.shape_cast %42 : vector<1x8x1x8x4xf32> to vector<8x8x4xf32>
    %c0_71 = arith.constant 0 : index
    %c0_72 = arith.constant 0 : index
    %c0_73 = arith.constant 0 : index
    %c0_74 = arith.constant 0 : index
    %44 = vector.load %arg4[%c0_71, %c0_72, %c0_73, %c0_74] : memref<1x8x8x4xf32, #tpu.memory_space<vmem>>, vector<1x8x8x4xf32>
    %45 = vector.shape_cast %44 : vector<1x8x8x4xf32> to vector<8x8x4xf32>
    %46 = arith.maximumf %45, %43 : vector<8x8x4xf32>
    %c0_75 = arith.constant 0 : index
    %c0_76 = arith.constant 0 : index
    %c0_77 = arith.constant 0 : index
    %c0_78 = arith.constant 0 : index
    %47 = vector.load %arg4[%c0_75, %c0_76, %c0_77, %c0_78] : memref<1x8x8x4xf32, #tpu.memory_space<vmem>>, vector<1x8x8x4xf32>
    %48 = vector.shape_cast %47 : vector<1x8x8x4xf32> to vector<8x8x4xf32>
    %49 = vector.shape_cast %46 : vector<8x8x4xf32> to vector<1x8x8x4xf32>
    tpu.vector_store %arg4[%c0_75, %c0_76, %c0_77, %c0_78], %49 {strides = array<i32>} : memref<1x8x8x4xf32, #tpu.memory_space<vmem>>, vector<1x8x8x4xf32>,
    %c0_79 = arith.constant 0 : index
    %c1_80 = arith.constant 1 : index
    %c0_81 = arith.constant 0 : index
    %c0_82 = arith.constant 0 : index
    %c0_83 = arith.constant 0 : index
    %50 = vector.load %arg2[%c0_79, %c1_80, %c0_81, %c0_82, %c0_83] : memref<1x8x2x9x8xf32, #tpu.memory_space<vmem>>, vector<1x7x1x8x4xf32>
    %51 = vector.shape_cast %50 : vector<1x7x1x8x4xf32> to vector<7x8x4xf32>
    %c0_84 = arith.constant 0 : index
    %c0_85 = arith.constant 0 : index
    %c0_86 = arith.constant 0 : index
    %c0_87 = arith.constant 0 : index
    %52 = vector.load %arg4[%c0_84, %c0_85, %c0_86, %c0_87] : memref<1x8x8x4xf32, #tpu.memory_space<vmem>>, vector<1x7x8x4xf32>
    %53 = vector.shape_cast %52 : vector<1x7x8x4xf32> to vector<7x8x4xf32>
    %54 = arith.maximumf %53, %51 : vector<7x8x4xf32>
    %c0_88 = arith.constant 0 : index
    %c0_89 = arith.constant 0 : index
    %c0_90 = arith.constant 0 : index
    %c0_91 = arith.constant 0 : index
    %55 = vector.load %arg4[%c0_88, %c0_89, %c0_90, %c0_91] : memref<1x8x8x4xf32, #tpu.memory_space<vmem>>, vector<1x7x8x4xf32>
    %56 = vector.shape_cast %55 : vector<1x7x8x4xf32> to vector<7x8x4xf32>
    %57 = vector.shape_cast %54 : vector<7x8x4xf32> to vector<1x7x8x4xf32>
    tpu.vector_store %arg4[%c0_88, %c0_89, %c0_90, %c0_91], %57 {strides = array<i32>} : memref<1x8x8x4xf32, #tpu.memory_space<vmem>>, vector<1x7x8x4xf32>,
    %c0_92 = arith.constant 0 : index
    %c0_93 = arith.constant 0 : index
    %c0_94 = arith.constant 0 : index
    %c0_95 = arith.constant 0 : index
    %c0_96 = arith.constant 0 : index
    %58 = vector.load %arg3[%c0_92, %c0_93, %c0_94, %c0_95, %c0_96] : memref<1x1x2x9x8xf32, #tpu.memory_space<vmem>>, vector<1x1x1x8x4xf32>
    %59 = vector.shape_cast %58 : vector<1x1x1x8x4xf32> to vector<8x4xf32>
    %c0_97 = arith.constant 0 : index
    %c7 = arith.constant 7 : index
    %c0_98 = arith.constant 0 : index
    %c0_99 = arith.constant 0 : index
    %60 = vector.load %arg4[%c0_97, %c7, %c0_98, %c0_99] : memref<1x8x8x4xf32, #tpu.memory_space<vmem>>, vector<1x1x8x4xf32>
    %61 = vector.shape_cast %60 : vector<1x1x8x4xf32> to vector<8x4xf32>
    %62 = arith.maximumf %61, %59 : vector<8x4xf32>
    %c0_100 = arith.constant 0 : index
    %c7_101 = arith.constant 7 : index
    %c0_102 = arith.constant 0 : index
    %c0_103 = arith.constant 0 : index
    %63 = vector.load %arg4[%c0_100, %c7_101, %c0_102, %c0_103] : memref<1x8x8x4xf32, #tpu.memory_space<vmem>>, vector<1x1x8x4xf32>
    %64 = vector.shape_cast %63 : vector<1x1x8x4xf32> to vector<8x4xf32>
    %65 = vector.shape_cast %62 : vector<8x4xf32> to vector<1x1x8x4xf32>
    tpu.vector_store %arg4[%c0_100, %c7_101, %c0_102, %c0_103], %65 {strides = array<i32>} : memref<1x8x8x4xf32, #tpu.memory_space<vmem>>, vector<1x1x8x4xf32>,
    %c0_104 = arith.constant 0 : index
    %c1_105 = arith.constant 1 : index
    %c0_106 = arith.constant 0 : index
    %c0_107 = arith.constant 0 : index
    %c4_108 = arith.constant 4 : index
    %66 = vector.load %arg2[%c0_104, %c1_105, %c0_106, %c0_107, %c4_108] : memref<1x8x2x9x8xf32, #tpu.memory_space<vmem>>, vector<1x7x1x8x4xf32>
    %67 = vector.shape_cast %66 : vector<1x7x1x8x4xf32> to vector<7x8x4xf32>
    %c0_109 = arith.constant 0 : index
    %c0_110 = arith.constant 0 : index
    %c0_111 = arith.constant 0 : index
    %c0_112 = arith.constant 0 : index
    %68 = vector.load %arg4[%c0_109, %c0_110, %c0_111, %c0_112] : memref<1x8x8x4xf32, #tpu.memory_space<vmem>>, vector<1x7x8x4xf32>
    %69 = vector.shape_cast %68 : vector<1x7x8x4xf32> to vector<7x8x4xf32>
    %70 = arith.maximumf %69, %67 : vector<7x8x4xf32>
    %c0_113 = arith.constant 0 : index
    %c0_114 = arith.constant 0 : index
    %c0_115 = arith.constant 0 : index
    %c0_116 = arith.constant 0 : index
    %71 = vector.load %arg4[%c0_113, %c0_114, %c0_115, %c0_116] : memref<1x8x8x4xf32, #tpu.memory_space<vmem>>, vector<1x7x8x4xf32>
    %72 = vector.shape_cast %71 : vector<1x7x8x4xf32> to vector<7x8x4xf32>
    %73 = vector.shape_cast %70 : vector<7x8x4xf32> to vector<1x7x8x4xf32>
    tpu.vector_store %arg4[%c0_113, %c0_114, %c0_115, %c0_116], %73 {strides = array<i32>} : memref<1x8x8x4xf32, #tpu.memory_space<vmem>>, vector<1x7x8x4xf32>,
    %c0_117 = arith.constant 0 : index
    %c0_118 = arith.constant 0 : index
    %c0_119 = arith.constant 0 : index
    %c0_120 = arith.constant 0 : index
    %c4_121 = arith.constant 4 : index
    %74 = vector.load %arg3[%c0_117, %c0_118, %c0_119, %c0_120, %c4_121] : memref<1x1x2x9x8xf32, #tpu.memory_space<vmem>>, vector<1x1x1x8x4xf32>
    %75 = vector.shape_cast %74 : vector<1x1x1x8x4xf32> to vector<8x4xf32>
    %c0_122 = arith.constant 0 : index
    %c7_123 = arith.constant 7 : index
    %c0_124 = arith.constant 0 : index
    %c0_125 = arith.constant 0 : index
    %76 = vector.load %arg4[%c0_122, %c7_123, %c0_124, %c0_125] : memref<1x8x8x4xf32, #tpu.memory_space<vmem>>, vector<1x1x8x4xf32>
    %77 = vector.shape_cast %76 : vector<1x1x8x4xf32> to vector<8x4xf32>
    %78 = arith.maximumf %77, %75 : vector<8x4xf32>
    %c0_126 = arith.constant 0 : index
    %c7_127 = arith.constant 7 : index
    %c0_128 = arith.constant 0 : index
    %c0_129 = arith.constant 0 : index
    %79 = vector.load %arg4[%c0_126, %c7_127, %c0_128, %c0_129] : memref<1x8x8x4xf32, #tpu.memory_space<vmem>>, vector<1x1x8x4xf32>
    %80 = vector.shape_cast %79 : vector<1x1x8x4xf32> to vector<8x4xf32>
    %81 = vector.shape_cast %78 : vector<8x4xf32> to vector<1x1x8x4xf32>
    tpu.vector_store %arg4[%c0_126, %c7_127, %c0_128, %c0_129], %81 {strides = array<i32>} : memref<1x8x8x4xf32, #tpu.memory_space<vmem>>, vector<1x1x8x4xf32>,
    %c0_130 = arith.constant 0 : index
    %c1_131 = arith.constant 1 : index
    %c0_132 = arith.constant 0 : index
    %c1_133 = arith.constant 1 : index
    %c0_134 = arith.constant 0 : index
    %82 = vector.load %arg2[%c0_130, %c1_131, %c0_132, %c1_133, %c0_134] : memref<1x8x2x9x8xf32, #tpu.memory_space<vmem>>, vector<1x7x1x8x4xf32>
    %83 = vector.shape_cast %82 : vector<1x7x1x8x4xf32> to vector<7x8x4xf32>
    %c0_135 = arith.constant 0 : index
    %c0_136 = arith.constant 0 : index
    %c0_137 = arith.constant 0 : index
    %c0_138 = arith.constant 0 : index
    %84 = vector.load %arg4[%c0_135, %c0_136, %c0_137, %c0_138] : memref<1x8x8x4xf32, #tpu.memory_space<vmem>>, vector<1x7x8x4xf32>
    %85 = vector.shape_cast %84 : vector<1x7x8x4xf32> to vector<7x8x4xf32>
    %86 = arith.maximumf %85, %83 : vector<7x8x4xf32>
    %c0_139 = arith.constant 0 : index
    %c0_140 = arith.constant 0 : index
    %c0_141 = arith.constant 0 : index
    %c0_142 = arith.constant 0 : index
    %87 = vector.load %arg4[%c0_139, %c0_140, %c0_141, %c0_142] : memref<1x8x8x4xf32, #tpu.memory_space<vmem>>, vector<1x7x8x4xf32>
    %88 = vector.shape_cast %87 : vector<1x7x8x4xf32> to vector<7x8x4xf32>
    %89 = vector.shape_cast %86 : vector<7x8x4xf32> to vector<1x7x8x4xf32>
    tpu.vector_store %arg4[%c0_139, %c0_140, %c0_141, %c0_142], %89 {strides = array<i32>} : memref<1x8x8x4xf32, #tpu.memory_space<vmem>>, vector<1x7x8x4xf32>,
    %c0_143 = arith.constant 0 : index
    %c0_144 = arith.constant 0 : index
    %c0_145 = arith.constant 0 : index
    %c1_146 = arith.constant 1 : index
    %c0_147 = arith.constant 0 : index
    %90 = vector.load %arg3[%c0_143, %c0_144, %c0_145, %c1_146, %c0_147] : memref<1x1x2x9x8xf32, #tpu.memory_space<vmem>>, vector<1x1x1x8x4xf32>
    %91 = vector.shape_cast %90 : vector<1x1x1x8x4xf32> to vector<8x4xf32>
    %c0_148 = arith.constant 0 : index
    %c7_149 = arith.constant 7 : index
    %c0_150 = arith.constant 0 : index
    %c0_151 = arith.constant 0 : index
    %92 = vector.load %arg4[%c0_148, %c7_149, %c0_150, %c0_151] : memref<1x8x8x4xf32, #tpu.memory_space<vmem>>, vector<1x1x8x4xf32>
    %93 = vector.shape_cast %92 : vector<1x1x8x4xf32> to vector<8x4xf32>
    %94 = arith.maximumf %93, %91 : vector<8x4xf32>
    %c0_152 = arith.constant 0 : index
    %c7_153 = arith.constant 7 : index
    %c0_154 = arith.constant 0 : index
    %c0_155 = arith.constant 0 : index
    %95 = vector.load %arg4[%c0_152, %c7_153, %c0_154, %c0_155] : memref<1x8x8x4xf32, #tpu.memory_space<vmem>>, vector<1x1x8x4xf32>
    %96 = vector.shape_cast %95 : vector<1x1x8x4xf32> to vector<8x4xf32>
    %97 = vector.shape_cast %94 : vector<8x4xf32> to vector<1x1x8x4xf32>
    tpu.vector_store %arg4[%c0_152, %c7_153, %c0_154, %c0_155], %97 {strides = array<i32>} : memref<1x8x8x4xf32, #tpu.memory_space<vmem>>, vector<1x1x8x4xf32>,
    return
  }
  func.func @transform_0(%arg0: i32, %arg1: i32) -> (i32, i32, i32, i32, i32) {
    %c0_i32 = arith.constant 0 : i32
    %c0_i32_0 = arith.constant 0 : i32
    %c0_i32_1 = arith.constant 0 : i32
    %c0_i32_2 = arith.constant 0 : i32
    return %arg0, %arg1, %c0_i32, %c0_i32_0, %c0_i32_1 : i32, i32, i32, i32, i32
  }
  func.func @transform_1(%arg0: i32, %arg1: i32) -> (i32, i32, i32, i32, i32) {
    %c1_i32 = arith.constant 1 : i32
    %0 = arith.addi %arg1, %c1_i32 : i32
    %c8_i32 = arith.constant 8 : i32
    %1 = arith.muli %0, %c8_i32 : i32
    %c0_i32 = arith.constant 0 : i32
    %c0_i32_0 = arith.constant 0 : i32
    %c0_i32_1 = arith.constant 0 : i32
    %c0_i32_2 = arith.constant 0 : i32
    return %arg0, %1, %c0_i32, %c0_i32_0, %c0_i32_1 : i32, i32, i32, i32, i32
  }
  func.func @transform_2(%arg0: i32, %arg1: i32) -> (i32, i32, i32, i32) {
    %c0_i32 = arith.constant 0 : i32
    %c0_i32_0 = arith.constant 0 : i32
    %c0_i32_1 = arith.constant 0 : i32
    return %arg0, %arg1, %c0_i32, %c0_i32_0 : i32, i32, i32, i32
  }
}

</mosaic_0001>

<bundles_post_ra>
// kernel: tpu_custom_call.1
= control target key start
LH: loop header
LB: loop body
LE: loop exit
PB: predicated region body
PF: predicated region fallthrough
CT: control target
= control target key end

     0   :  { %s906_s9 = smov 0   ;;  %s908_s10 = smov 0   ;;  %s1352_s0 = inlined_call_operand.vmem [shape: f32[2,9,2,9,8], index: 0, kind: input, shape index: {}]   ;;  %s1353_s1 = inlined_call_operand.vmem [shape: f32[2,9,2,9,8], index: 1, kind: input, shape index: {}]   ;;  %s1354_s2 = inlined_call_operand.vmem [shape: f32[2,8,8,4], index: 2, kind: output, shape index: {}]  }
   0x1   :  { %s910_s11 = smov 0  }
   0x2 LB: > { %s24_s12 = sadd.s32 1, %s883_s10  ;;  %p775_p0 = scmp.ge.s32.totalorder %s887_s11, 1  ;;  %s887_s11 = sphi %s910_s11, %s12_s11   ;;  %s883_s10 = sphi %s908_s10, %s1356_s10   ;;  %s879_s9 = sphi %s906_s9, %s1355_s9  }
   0x3   : > { %p26_p1 = scmp.ge.s32.totalorder %s24_s12, 2  ;;  %p170_p2 = scmp.lt.s32.totalorder %s887_s11, 3 }
   0x5   : > { %s1358_s12 = smov (%p26_p1, %s24_s12), 0  ;;  %p171_p3 = pnand %p775_p0, %p170_p2 }
   0x6   : > { %p225_p4 = scmp.lt.s32.totalorder (!%p171_p3), %s879_s9, 1  ;;  %vm264_vm0 = vcmask (!%p171_p3), 31744   ;;  %v889_v0 = vmov (!%p171_p3), 0.0   ;;  %s890_s21 = smov (!%p171_p3), 124  }
   0x7   : > { %174 = sbr.rel (%p171_p3) target bundleno = 220 (0xdc), region = 28 }
   0xe   : > { %s1360_s9 = smov (!%p225_p4, %s879_s9), 1 }
   0xf   : > { %s836_s13 = smul.u32 288, %s1360_s9  ;;  %s835_s14 = sshll.u32 %s1360_s9, 6 }
  0x10   : > { %s931_s17 = scalar_lea.vmem %s1354_s2, %s835_s14 }
  0x11   : > { %s938_s20 = scalar_lea.vmem %s1352_s0, %s836_s13  ;;  %267 = vst.msk [vmem:[%s931_s17 + $0x10] sm:$0xff] %vm264_vm0, %v889_v0  ;;  %265 = vst.msk [vmem:[%s931_s17] sm:$0xff] %vm264_vm0, %v889_v0  ;;  %s834_s22 = sadd.s32 256, %s836_s13 }
  0x12   : > { %266 = vst.msk [vmem:[%s931_s17 + $0x8] sm:$0xff] %vm264_vm0, %v889_v0  ;;  %268 = vst.msk [vmem:[%s931_s17 + $0x18] sm:$0xff] %vm264_vm0, %v889_v0  ;;  %v957_v1 = vld [vmem:[%s938_s20 + $0x40] sm:$0xff]  ;;  %v1021_v25 = vld [vmem:[%s938_s20 + $0x10] sm:$0xff]  ;;  %s1077_s25 = scalar_lea.vmem %s1353_s1, %s834_s22 }
  0x13   : > { %269 = vst.msk [vmem:[%s931_s17 + $0x20] sm:$0xff] %vm264_vm0, %v889_v0  ;;  %270 = vst.msk [vmem:[%s931_s17 + $0x28] sm:$0xff] %vm264_vm0, %v889_v0  ;;  %v305_v2 = vld [vmem:[%s938_s20] sm:$0xff]  ;;  %333 = vrot.lane.b32.xlu1 %v957_v1, %s890_s21 }
  0x14   : > { %271 = vst.msk [vmem:[%s931_s17 + $0x30] sm:$0xff] %vm264_vm0, %v889_v0  ;;  %272 = vst.msk [vmem:[%s931_s17 + $0x38] sm:$0xff] %vm264_vm0, %v889_v0  ;;  %329 = vrot.lane.b32.xlu0 %v305_v2, %s890_s21  ;;  %v964_v3 = vld [vmem:[%s938_s20 + $0x60] sm:$0xff] }
  0x15   : > { %v967_v4 = vld [vmem:[%s938_s20 + $0x20] sm:$0xff]  ;;  %v1024_v26 = vld [vmem:[%s938_s20 + $0x30] sm:$0xff] }
  0x16   : > { %v974_v5 = vld [vmem:[%s938_s20 + $0xa0] sm:$0xff]  ;;  %v1035_v27 = vld [vmem:[%s938_s20 + $0x50] sm:$0xff] }
  0x17   : > { %335 = vrot.lane.b32.xlu1 %v964_v3, %s890_s21  ;;  %v977_v6 = vld [vmem:[%s938_s20 + $0x80] sm:$0xff]  ;;  %v1038_v28 = vld [vmem:[%s938_s20 + $0x70] sm:$0xff] }
  0x18   : > { %331 = vrot.lane.b32.xlu0 %v967_v4, %s890_s21  ;;  %v283_v7 = vld [vmem:[%s931_s17 + $0x10] sm:$0xff]  ;;  %v281_v9 = vld [vmem:[%s931_s17] sm:$0xff] }
  0x19   : > { %v291_v8 = vmax.f32 %v283_v7, %v957_v1  ;;  %v289_v10 = vmax.f32 %v281_v9, %v305_v2  ;;  %v284_v11 = vld [vmem:[%s931_s17 + $0x18] sm:$0xff]  ;;  %v282_v12 = vld [vmem:[%s931_s17 + $0x8] sm:$0xff]  ;;  %v994_v16 = vld [vmem:[%s938_s20 + $0xe0] sm:$0xff] }
  0x1a   : > { %v292_v13 = vmax.f32 %v284_v11, %v964_v3  ;;  %v290_v14 = vmax.f32 %v282_v12, %v967_v4  ;;  %v286_v15 = vld [vmem:[%s931_s17 + $0x28] sm:$0xff]  ;;  %v997_v17 = vld [vmem:[%s938_s20 + $0xc0] sm:$0xff]  ;;  %v1045_v29 = vld [vmem:[%s938_s20 + $0xb0] sm:$0xff] }
  0x1b   : > { %339 = vrot.lane.b32.xlu1 %v974_v5, %s890_s21  ;;  %299 = vst.msk [vmem:[%s931_s17 + $0x10] sm:$0xff] %vm264_vm0, %v291_v8  ;;  %297 = vst.msk [vmem:[%s931_s17] sm:$0xff] %vm264_vm0, %v289_v10  ;;  %v294_v18 = vmax.f32 %v286_v15, %v974_v5  ;;  %v285_v19 = vld [vmem:[%s931_s17 + $0x20] sm:$0xff] }
  0x1c   : > { %337 = vrot.lane.b32.xlu0 %v977_v6, %s890_s21  ;;  %300 = vst.msk [vmem:[%s931_s17 + $0x18] sm:$0xff] %vm264_vm0, %v292_v13  ;;  %298 = vst.msk [vmem:[%s931_s17 + $0x8] sm:$0xff] %vm264_vm0, %v290_v14  ;;  %v293_v20 = vmax.f32 %v285_v19, %v977_v6  ;;  %v288_v21 = vld [vmem:[%s931_s17 + $0x38] sm:$0xff] }
  0x1d   : > { %v287_v22 = vld [vmem:[%s931_s17 + $0x30] sm:$0xff]  ;;  %302 = vst.msk [vmem:[%s931_s17 + $0x28] sm:$0xff] %vm264_vm0, %v294_v18  ;;  %v296_v23 = vmax.f32 %v288_v21, %v994_v16  ;;  %v1084_v33 = vld [vmem:[%s1077_s25] sm:$0xff] }
  0x1e   : > { %v295_v24 = vmax.f32 %v287_v22, %v997_v17  ;;  %301 = vst.msk [vmem:[%s931_s17 + $0x20] sm:$0xff] %vm264_vm0, %v293_v20  ;;  %v1048_v30 = vld [vmem:[%s938_s20 + $0x90] sm:$0xff]  ;;  %v1105_v48 = vld [vmem:[%s938_s20 + $0x41] sm:$0xff] }
  0x1f   : > { %343 = vrot.lane.b32.xlu1 %v994_v16, %s890_s21  ;;  %304 = vst.msk [vmem:[%s931_s17 + $0x38] sm:$0xff] %vm264_vm0, %v296_v23  ;;  %v1055_v31 = vld [vmem:[%s938_s20 + $0xf0] sm:$0xff]  ;;  %v369_v49 = vld [vmem:[%s938_s20 + $0x1] sm:$0xff] }
  0x20   : > { %341 = vrot.lane.b32.xlu0 %v997_v17, %s890_s21  ;;  %303 = vst.msk [vmem:[%s931_s17 + $0x30] sm:$0xff] %vm264_vm0, %v295_v24  ;;  %v1058_v32 = vld [vmem:[%s938_s20 + $0xd0] sm:$0xff]  ;;  %v1118_v60 = vld [vmem:[%s938_s20 + $0x61] sm:$0xff] }
  0x21   : > { %v1121_v61 = vld [vmem:[%s938_s20 + $0x21] sm:$0xff] }
  0x22   : > { %v315_v34 = vld [vmem:[%s931_s17 + $0x10] sm:$0xff]  ;;  %v313_v35 = vld [vmem:[%s931_s17] sm:$0xff] }
  0x23   : > { %460 = vrot.lane.b32.xlu1 %v1024_v26, %s890_s21  ;;  %v316_v40 = vld [vmem:[%s931_s17 + $0x18] sm:$0xff]  ;;  %v314_v41 = vld [vmem:[%s931_s17 + $0x8] sm:$0xff] }
  0x24   : > { %458 = vrot.lane.b32.xlu0 %v1021_v25, %s890_s21  ;;  %v318_v46 = vld [vmem:[%s931_s17 + $0x28] sm:$0xff] }
  0x25   : > { %v317_v47 = vld [vmem:[%s931_s17 + $0x20] sm:$0xff] }
  0x26   : > { %v320_v54 = vld [vmem:[%s931_s17 + $0x38] sm:$0xff]  ;;  %v1136_v11 = vld [vmem:[%s938_s20 + $0xa1] sm:$0xff] }
  0x27   : > { %464 = vrot.lane.b32.xlu1 %v1038_v28, %s890_s21  ;;  %v319_v57 = vld [vmem:[%s931_s17 + $0x30] sm:$0xff]  ;;  %v1139_v12 = vld [vmem:[%s938_s20 + $0x81] sm:$0xff] }
  0x28   : > { %462 = vrot.lane.b32.xlu0 %v1035_v27, %s890_s21  ;;  %v1150_v19 = vld [vmem:[%s938_s20 + $0xe1] sm:$0xff] }
  0x29   : > { %v1153_v20 = vld [vmem:[%s938_s20 + $0xc1] sm:$0xff] }
  0x2b   : > { %468 = vrot.lane.b32.xlu1 %v1045_v29, %s890_s21 }
  0x2c   : > { %466 = vrot.lane.b32.xlu0 %v1048_v30, %s890_s21 }
  0x2f   : > { %472 = vrot.lane.b32.xlu1 %v1055_v31, %s890_s21 }
  0x30   : > { %470 = vrot.lane.b32.xlu0 %v1058_v32, %s890_s21 }
  0x33   : > { %587 = vrot.lane.b32.xlu1 %v957_v1, %s890_s21 }
  0x34   : > { %585 = vrot.lane.b32.xlu0 %v967_v4, %s890_s21 }
  0x37   : > { %591 = vrot.lane.b32.xlu1 %v977_v6, %s890_s21 }
  0x38   : > { %589 = vrot.lane.b32.xlu0 %v964_v3, %s890_s21 }
  0x3b   : > { %595 = vrot.lane.b32.xlu1 %v997_v17, %s890_s21 }
  0x3c   : > { %593 = vrot.lane.b32.xlu0 %v974_v5, %s890_s21 }
  0x3f   : > { %623 = vrot.lane.b32.xlu1 %v1084_v33, %s890_s21 }
  0x40   : > { %597 = vrot.lane.b32.xlu0 %v994_v16, %s890_s21 }
  0x85   : > { %v334_v36 = vpop.permute.xlu1 %333 }
  0x86   : > { %v330_v37 = vpop.permute.xlu0 %329  ;;  %v355_v38 = vmax.f32 %v315_v34, %v334_v36 }
  0x87   : > { %v353_v39 = vmax.f32 %v313_v35, %v330_v37 }
  0x88   : > { %363 = vst.msk [vmem:[%s931_s17 + $0x10] sm:$0xff] %vm264_vm0, %v355_v38 }
  0x89   : > { %361 = vst.msk [vmem:[%s931_s17] sm:$0xff] %vm264_vm0, %v353_v39  ;;  %v336_v42 = vpop.permute.xlu1 %335 }
  0x8a   : > { %v332_v43 = vpop.permute.xlu0 %331  ;;  %v356_v44 = vmax.f32 %v316_v40, %v336_v42 }
  0x8b   : > { %v354_v45 = vmax.f32 %v314_v41, %v332_v43 }
  0x8c   : > { %364 = vst.msk [vmem:[%s931_s17 + $0x18] sm:$0xff] %vm264_vm0, %v356_v44 }
  0x8d   : > { %362 = vst.msk [vmem:[%s931_s17 + $0x8] sm:$0xff] %vm264_vm0, %v354_v45  ;;  %v340_v50 = vpop.permute.xlu1 %339 }
  0x8e   : > { %v338_v51 = vpop.permute.xlu0 %337  ;;  %v358_v52 = vmax.f32 %v318_v46, %v340_v50 }
  0x8f   : > { %v357_v53 = vmax.f32 %v317_v47, %v338_v51  ;;  %v379_v55 = vld [vmem:[%s931_s17 + $0x10] sm:$0xff] }
  0x90   : > { %v377_v56 = vld [vmem:[%s931_s17] sm:$0xff]  ;;  %v387_v58 = vmax.f32 %v379_v55, %v1105_v48  ;;  %366 = vst.msk [vmem:[%s931_s17 + $0x28] sm:$0xff] %vm264_vm0, %v358_v52 }
  0x91   : > { %v385_v59 = vmax.f32 %v377_v56, %v369_v49  ;;  %365 = vst.msk [vmem:[%s931_s17 + $0x20] sm:$0xff] %vm264_vm0, %v357_v53  ;;  %v344_v62 = vpop.permute.xlu1 %343 }
  0x92   : > { %v342_v63 = vpop.permute.xlu0 %341  ;;  %395 = vst.msk [vmem:[%s931_s17 + $0x10] sm:$0xff] %vm264_vm0, %v387_v58  ;;  %v360_v0 = vmax.f32 %v320_v54, %v344_v62 }
  0x93   : > { %393 = vst.msk [vmem:[%s931_s17] sm:$0xff] %vm264_vm0, %v385_v59  ;;  %v359_v2 = vmax.f32 %v319_v57, %v342_v63  ;;  %v380_v7 = vld [vmem:[%s931_s17 + $0x18] sm:$0xff] }
  0x94   : > { %v378_v8 = vld [vmem:[%s931_s17 + $0x8] sm:$0xff]  ;;  %v388_v9 = vmax.f32 %v380_v7, %v1118_v60  ;;  %368 = vst.msk [vmem:[%s931_s17 + $0x38] sm:$0xff] %vm264_vm0, %v360_v0  ;;  %v796_v59 = vld [vmem:[%s938_s20 + $0x11] sm:$0xff] }
  0x95   : > { %v386_v10 = vmax.f32 %v378_v8, %v1121_v61  ;;  %367 = vst.msk [vmem:[%s931_s17 + $0x30] sm:$0xff] %vm264_vm0, %v359_v2  ;;  %v461_v37 = vpop.permute.xlu1 %460 }
  0x96   : > { %396 = vst.msk [vmem:[%s931_s17 + $0x18] sm:$0xff] %vm264_vm0, %v388_v9  ;;  %v459_v36 = vpop.permute.xlu0 %458 }
  0x97   : > { %394 = vst.msk [vmem:[%s931_s17 + $0x8] sm:$0xff] %vm264_vm0, %v386_v10  ;;  %v382_v13 = vld [vmem:[%s931_s17 + $0x28] sm:$0xff] }
  0x98   : > { %v381_v14 = vld [vmem:[%s931_s17 + $0x20] sm:$0xff]  ;;  %v390_v15 = vmax.f32 %v382_v13, %v1136_v11  ;;  %v797_v13 = vld [vmem:[%s938_s20 + $0x31] sm:$0xff] }
  0x99   : > { %v389_v18 = vmax.f32 %v381_v14, %v1139_v12  ;;  %v412_v22 = vld [vmem:[%s931_s17 + $0x10] sm:$0xff]  ;;  %v465_v43 = vpop.permute.xlu1 %464 }
  0x9a   : > { %v410_v21 = vld [vmem:[%s931_s17] sm:$0xff]  ;;  %398 = vst.msk [vmem:[%s931_s17 + $0x28] sm:$0xff] %vm264_vm0, %v390_v15  ;;  %v420_v24 = vmax.f32 %v412_v22, %v1035_v27  ;;  %v463_v42 = vpop.permute.xlu0 %462  ;;  %v799_v15 = vld [vmem:[%s938_s20 + $0x71] sm:$0xff] }
  0x9b   : > { %397 = vst.msk [vmem:[%s931_s17 + $0x20] sm:$0xff] %vm264_vm0, %v389_v18  ;;  %v418_v23 = vmax.f32 %v410_v21, %v1021_v25  ;;  %v384_v34 = vld [vmem:[%s931_s17 + $0x38] sm:$0xff] }
  0x9c   : > { %v383_v35 = vld [vmem:[%s931_s17 + $0x30] sm:$0xff]  ;;  %v392_v38 = vmax.f32 %v384_v34, %v1150_v19  ;;  %428 = vst.msk [vmem:[%s931_s17 + $0x10] sm:$0xff] %vm264_vm0, %v420_v24 }
  0x9d   : > { %v391_v39 = vmax.f32 %v383_v35, %v1153_v20  ;;  %426 = vst.msk [vmem:[%s931_s17] sm:$0xff] %vm264_vm0, %v418_v23  ;;  %v413_v40 = vld [vmem:[%s931_s17 + $0x18] sm:$0xff]  ;;  %v469_v55 = vpop.permute.xlu1 %468 }
  0x9e   : > { %v411_v25 = vld [vmem:[%s931_s17 + $0x8] sm:$0xff]  ;;  %400 = vst.msk [vmem:[%s931_s17 + $0x38] sm:$0xff] %vm264_vm0, %v392_v38  ;;  %v421_v41 = vmax.f32 %v413_v40, %v1038_v28  ;;  %v467_v56 = vpop.permute.xlu0 %466  ;;  %v800_v38 = vld [vmem:[%s938_s20 + $0x91] sm:$0xff] }
  0x9f   : > { %399 = vst.msk [vmem:[%s931_s17 + $0x30] sm:$0xff] %vm264_vm0, %v391_v39  ;;  %v419_v27 = vmax.f32 %v411_v25, %v1024_v26 }
  0xa0   : > { %429 = vst.msk [vmem:[%s931_s17 + $0x18] sm:$0xff] %vm264_vm0, %v421_v41  ;;  %v803_v41 = vld [vmem:[%s938_s20 + $0xf1] sm:$0xff] }
  0xa1   : > { %427 = vst.msk [vmem:[%s931_s17 + $0x8] sm:$0xff] %vm264_vm0, %v419_v27  ;;  %v415_v44 = vld [vmem:[%s931_s17 + $0x28] sm:$0xff]  ;;  %v473_v8 = vpop.permute.xlu1 %472 }
  0xa2   : > { %v414_v45 = vld [vmem:[%s931_s17 + $0x20] sm:$0xff]  ;;  %v423_v46 = vmax.f32 %v415_v44, %v1045_v29  ;;  %v471_v9 = vpop.permute.xlu0 %470 }
  0xa3   : > { %v422_v26 = vmax.f32 %v414_v45, %v1048_v30  ;;  %v444_v49 = vld [vmem:[%s931_s17 + $0x10] sm:$0xff] }
  0xa4   : > { %v442_v47 = vld [vmem:[%s931_s17] sm:$0xff]  ;;  %v484_v50 = vmax.f32 %v444_v49, %v463_v42  ;;  %431 = vst.msk [vmem:[%s931_s17 + $0x28] sm:$0xff] %vm264_vm0, %v423_v46  ;;  %v802_v42 = vld [vmem:[%s938_s20 + $0xd1] sm:$0xff] }
  0xa5   : > { %v482_v28 = vmax.f32 %v442_v47, %v459_v36  ;;  %430 = vst.msk [vmem:[%s931_s17 + $0x20] sm:$0xff] %vm264_vm0, %v422_v26  ;;  %v417_v51 = vld [vmem:[%s931_s17 + $0x38] sm:$0xff] }
  0xa6   : > { %v416_v52 = vld [vmem:[%s931_s17 + $0x30] sm:$0xff]  ;;  %492 = vst.msk [vmem:[%s931_s17 + $0x10] sm:$0xff] %vm264_vm0, %v484_v50  ;;  %v425_v29 = vmax.f32 %v417_v51, %v1055_v31  ;;  %v586_v49 = vpop.permute.xlu0 %585 }
  0xa7   : > { %490 = vst.msk [vmem:[%s931_s17] sm:$0xff] %vm264_vm0, %v482_v28  ;;  %v424_v30 = vmax.f32 %v416_v52, %v1058_v32  ;;  %v445_v54 = vld [vmem:[%s931_s17 + $0x18] sm:$0xff]  ;;  %v588_v28 = vpop.permute.xlu1 %587 }
  0xa8   : > { %v443_v53 = vld [vmem:[%s931_s17 + $0x8] sm:$0xff]  ;;  %v485_v58 = vmax.f32 %v445_v54, %v465_v43  ;;  %433 = vst.msk [vmem:[%s931_s17 + $0x38] sm:$0xff] %vm264_vm0, %v425_v29  ;;  %v798_v31 = vld [vmem:[%s938_s20 + $0x51] sm:$0xff] }
  0xa9   : > { %v483_v57 = vmax.f32 %v443_v53, %v461_v37  ;;  %432 = vst.msk [vmem:[%s931_s17 + $0x30] sm:$0xff] %vm264_vm0, %v424_v30  ;;  %v801_v37 = vld [vmem:[%s938_s20 + $0xb1] sm:$0xff] }
  0xaa   : > { %493 = vst.msk [vmem:[%s931_s17 + $0x18] sm:$0xff] %vm264_vm0, %v485_v58  ;;  %v590_v30 = vpop.permute.xlu0 %589 }
  0xab   : > { %491 = vst.msk [vmem:[%s931_s17 + $0x8] sm:$0xff] %vm264_vm0, %v483_v57  ;;  %v447_v32 = vld [vmem:[%s931_s17 + $0x28] sm:$0xff]  ;;  %v592_v53 = vpop.permute.xlu1 %591 }
  0xac   : > { %v446_v62 = vld [vmem:[%s931_s17 + $0x20] sm:$0xff]  ;;  %v487_v63 = vmax.f32 %v447_v32, %v469_v55 }
  0xad   : > { %v486_v0 = vmax.f32 %v446_v62, %v467_v56  ;;  %v508_v7 = vld [vmem:[%s931_s17 + $0x10] sm:$0xff] }
  0xae   : > { %v506_v2 = vld [vmem:[%s931_s17] sm:$0xff]  ;;  %v516_v14 = vmax.f32 %v508_v7, %v798_v31  ;;  %495 = vst.msk [vmem:[%s931_s17 + $0x28] sm:$0xff] %vm264_vm0, %v487_v63 }
  0xaf   : > { %v514_v10 = vmax.f32 %v506_v2, %v796_v59  ;;  %494 = vst.msk [vmem:[%s931_s17 + $0x20] sm:$0xff] %vm264_vm0, %v486_v0  ;;  %v449_v18 = vld [vmem:[%s931_s17 + $0x38] sm:$0xff]  ;;  %v596_v0 = vpop.permute.xlu1 %595  ;;  %v594_v2 = vpop.permute.xlu0 %593 }
  0xb0   : > { %v448_v21 = vld [vmem:[%s931_s17 + $0x30] sm:$0xff]  ;;  %524 = vst.msk [vmem:[%s931_s17 + $0x10] sm:$0xff] %vm264_vm0, %v516_v14  ;;  %v489_v22 = vmax.f32 %v449_v18, %v473_v8 }
  0xb1   : > { %522 = vst.msk [vmem:[%s931_s17] sm:$0xff] %vm264_vm0, %v514_v10  ;;  %v488_v23 = vmax.f32 %v448_v21, %v471_v9  ;;  %v509_v34 = vld [vmem:[%s931_s17 + $0x18] sm:$0xff] }
  0xb2   : > { %v507_v24 = vld [vmem:[%s931_s17 + $0x8] sm:$0xff]  ;;  %v517_v36 = vmax.f32 %v509_v34, %v799_v15  ;;  %497 = vst.msk [vmem:[%s931_s17 + $0x38] sm:$0xff] %vm264_vm0, %v489_v22 }
  0xb3   : > { %v515_v35 = vmax.f32 %v507_v24, %v797_v13  ;;  %496 = vst.msk [vmem:[%s931_s17 + $0x30] sm:$0xff] %vm264_vm0, %v488_v23  ;;  %v624_v15 = vpop.permute.xlu1 %623  ;;  %v598_v18 = vpop.permute.xlu0 %597 }
  0xb4   : > { %525 = vst.msk [vmem:[%s931_s17 + $0x18] sm:$0xff] %vm264_vm0, %v517_v36 }
  0xb5   : > { %523 = vst.msk [vmem:[%s931_s17 + $0x8] sm:$0xff] %vm264_vm0, %v515_v35  ;;  %v511_v39 = vld [vmem:[%s931_s17 + $0x28] sm:$0xff] }
  0xb6   : > { %v510_v25 = vld [vmem:[%s931_s17 + $0x20] sm:$0xff]  ;;  %v519_v40 = vmax.f32 %v511_v39, %v801_v37 }
  0xb7   : > { %v518_v27 = vmax.f32 %v510_v25, %v800_v38  ;;  %v540_v44 = vld [vmem:[%s931_s17 + $0x10] sm:$0xff] }
  0xb8   : > { %v538_v43 = vld [vmem:[%s931_s17] sm:$0xff]  ;;  %527 = vst.msk [vmem:[%s931_s17 + $0x28] sm:$0xff] %vm264_vm0, %v519_v40  ;;  %v547_v46 = vmax.f32 %v540_v44, %v964_v3 }
  0xb9   : > { %526 = vst.msk [vmem:[%s931_s17 + $0x20] sm:$0xff] %vm264_vm0, %v518_v27  ;;  %v545_v45 = vmax.f32 %v538_v43, %v967_v4  ;;  %v513_v26 = vld [vmem:[%s931_s17 + $0x38] sm:$0xff]  ;;  %v656_v27 = vld [vmem:[%s1077_s25 + $0x1] sm:$0xff] }
  0xba   : > { %v512_v47 = vld [vmem:[%s931_s17 + $0x30] sm:$0xff]  ;;  %v521_v50 = vmax.f32 %v513_v26, %v803_v41  ;;  %554 = vst.msk [vmem:[%s931_s17 + $0x10] sm:$0xff] %vm264_vm0, %v547_v46 }
  0xbb   : > { %v520_v51 = vmax.f32 %v512_v47, %v802_v42  ;;  %552 = vst.msk [vmem:[%s931_s17] sm:$0xff] %vm264_vm0, %v545_v45  ;;  %v541_v4 = vld [vmem:[%s931_s17 + $0x18] sm:$0xff] }
  0xbc   : > { %v539_v52 = vld [vmem:[%s931_s17 + $0x8] sm:$0xff]  ;;  %529 = vst.msk [vmem:[%s931_s17 + $0x38] sm:$0xff] %vm264_vm0, %v521_v50  ;;  %v548_v29 = vmax.f32 %v541_v4, %v977_v6 }
  0xbd   : > { %528 = vst.msk [vmem:[%s931_s17 + $0x30] sm:$0xff] %vm264_vm0, %v520_v51  ;;  %v546_v3 = vmax.f32 %v539_v52, %v957_v1 }
  0xbe   : > { %555 = vst.msk [vmem:[%s931_s17 + $0x18] sm:$0xff] %vm264_vm0, %v548_v29 }
  0xbf   : > { %553 = vst.msk [vmem:[%s931_s17 + $0x8] sm:$0xff] %vm264_vm0, %v546_v3  ;;  %v543_v54 = vld [vmem:[%s931_s17 + $0x28] sm:$0xff] }
  0xc0   : > { %v542_v55 = vld [vmem:[%s931_s17 + $0x20] sm:$0xff]  ;;  %v550_v56 = vmax.f32 %v543_v54, %v997_v17 }
  0xc1   : > { %v549_v1 = vmax.f32 %v542_v55, %v974_v5  ;;  %v573_v58 = vld [vmem:[%s931_s17 + $0x10] sm:$0xff] }
  0xc2   : > { %v571_v57 = vld [vmem:[%s931_s17] sm:$0xff]  ;;  %v608_v59 = vmax.f32 %v573_v58, %v590_v30  ;;  %557 = vst.msk [vmem:[%s931_s17 + $0x28] sm:$0xff] %vm264_vm0, %v550_v56 }
  0xc3   : > { %v606_v6 = vmax.f32 %v571_v57, %v586_v49  ;;  %556 = vst.msk [vmem:[%s931_s17 + $0x20] sm:$0xff] %vm264_vm0, %v549_v1  ;;  %v811_v31 = vld [vmem:[%s931_s17 + $0x38] sm:$0xff] }
  0xc4   : > { %v544_v32 = vld [vmem:[%s931_s17 + $0x30] sm:$0xff]  ;;  %615 = vst.msk [vmem:[%s931_s17 + $0x10] sm:$0xff] %vm264_vm0, %v608_v59  ;;  %v562_v5 = vmax.f32 %v811_v31, %v1084_v33 }
  0xc5   : > { %613 = vst.msk [vmem:[%s931_s17] sm:$0xff] %vm264_vm0, %v606_v6  ;;  %v551_v17 = vmax.f32 %v544_v32, %v994_v16  ;;  %v574_v63 = vld [vmem:[%s931_s17 + $0x18] sm:$0xff] }
  0xc6   : > { %v572_v62 = vld [vmem:[%s931_s17 + $0x8] sm:$0xff]  ;;  %v609_v8 = vmax.f32 %v574_v63, %v592_v53  ;;  %812 = vst.msk [vmem:[%s931_s17 + $0x38] sm:$0xff] %vm264_vm0, %v562_v5 }
  0xc7   : > { %v607_v7 = vmax.f32 %v572_v62, %v588_v28  ;;  %558 = vst.msk [vmem:[%s931_s17 + $0x30] sm:$0xff] %vm264_vm0, %v551_v17 }
  0xc8   : > { %616 = vst.msk [vmem:[%s931_s17 + $0x18] sm:$0xff] %vm264_vm0, %v609_v8 }
  0xc9   : > { %614 = vst.msk [vmem:[%s931_s17 + $0x8] sm:$0xff] %vm264_vm0, %v607_v7  ;;  %v576_v16 = vld [vmem:[%s931_s17 + $0x28] sm:$0xff] }
  0xca   : > { %v575_v33 = vld [vmem:[%s931_s17 + $0x20] sm:$0xff]  ;;  %v611_v9 = vmax.f32 %v576_v16, %v596_v0 }
  0xcb   : > { %v610_v10 = vmax.f32 %v575_v33, %v594_v2  ;;  %v637_v14 = vld [vmem:[%s931_s17 + $0x10] sm:$0xff] }
  0xcc   : > { %v635_v13 = vld [vmem:[%s931_s17] sm:$0xff]  ;;  %v644_v22 = vmax.f32 %v637_v14, %v1118_v60  ;;  %618 = vst.msk [vmem:[%s931_s17 + $0x28] sm:$0xff] %vm264_vm0, %v611_v9 }
  0xcd   : > { %v642_v21 = vmax.f32 %v635_v13, %v1121_v61  ;;  %617 = vst.msk [vmem:[%s931_s17 + $0x20] sm:$0xff] %vm264_vm0, %v610_v10  ;;  %v820_v23 = vld [vmem:[%s931_s17 + $0x38] sm:$0xff] }
  0xce   : > { %v577_v24 = vld [vmem:[%s931_s17 + $0x30] sm:$0xff]  ;;  %651 = vst.msk [vmem:[%s931_s17 + $0x10] sm:$0xff] %vm264_vm0, %v644_v22  ;;  %v626_v34 = vmax.f32 %v820_v23, %v624_v15 }
  0xcf   : > { %649 = vst.msk [vmem:[%s931_s17] sm:$0xff] %vm264_vm0, %v642_v21  ;;  %v612_v61 = vmax.f32 %v577_v24, %v598_v18  ;;  %v638_v35 = vld [vmem:[%s931_s17 + $0x18] sm:$0xff] }
  0xd0   : > { %v636_v60 = vld [vmem:[%s931_s17 + $0x8] sm:$0xff]  ;;  %v645_v37 = vmax.f32 %v638_v35, %v1139_v12  ;;  %821 = vst.msk [vmem:[%s931_s17 + $0x38] sm:$0xff] %vm264_vm0, %v626_v34 }
  0xd1   : > { %v643_v36 = vmax.f32 %v636_v60, %v1105_v48  ;;  %619 = vst.msk [vmem:[%s931_s17 + $0x30] sm:$0xff] %vm264_vm0, %v612_v61 }
  0xd2   : > { %652 = vst.msk [vmem:[%s931_s17 + $0x18] sm:$0xff] %vm264_vm0, %v645_v37 }
  0xd3   : > { %650 = vst.msk [vmem:[%s931_s17 + $0x8] sm:$0xff] %vm264_vm0, %v643_v36  ;;  %v640_v38 = vld [vmem:[%s931_s17 + $0x28] sm:$0xff] }
  0xd4   : > { %v639_v39 = vld [vmem:[%s931_s17 + $0x20] sm:$0xff]  ;;  %v647_v25 = vmax.f32 %v640_v38, %v1153_v20 }
  0xd5   : > { %v646_v40 = vmax.f32 %v639_v39, %v1136_v11 }
  0xd6   : > { %654 = vst.msk [vmem:[%s931_s17 + $0x28] sm:$0xff] %vm264_vm0, %v647_v25 }
  0xd7   : > { %653 = vst.msk [vmem:[%s931_s17 + $0x20] sm:$0xff] %vm264_vm0, %v646_v40  ;;  %v829_v48 = vld [vmem:[%s931_s17 + $0x38] sm:$0xff] }
  0xd8   : > { %v641_v12 = vld [vmem:[%s931_s17 + $0x30] sm:$0xff]  ;;  %v658_v41 = vmax.f32 %v829_v48, %v656_v27 }
  0xd9   : > { %v648_v42 = vmax.f32 %v641_v12, %v1150_v19 }
  0xda   : > { %830 = vst.msk [vmem:[%s931_s17 + $0x38] sm:$0xff] %vm264_vm0, %v658_v41 }
  0xdb   : > { %655 = vst.msk [vmem:[%s931_s17 + $0x30] sm:$0xff] %vm264_vm0, %v648_v42 }
  0xdc PF: > { %s12_s11 = sadd.s32 1, %s887_s11   ;;  %s1355_s9 = smov %s883_s10 }
  0xdd   : > { %p9_p5 = scmp.ge.s32.totalorder %s12_s11, 4   ;;  %s1356_s10 = smov %s1358_s12 }
  0xdf   :  { %11 = sbr.rel (!%p9_p5) target bundleno = 2 (0x2), region = 64 }

</bundles_post_ra>
